<compile_context>
chip_gen: v6e
topology: v6e:2x2x1
jax: 0.10.0
libtpu: 0.0.40
codegen_flags: <defaults>
</compile_context>

<pallas_src>
import functools

import jax
import jax.numpy as jnp
from jax.experimental import pallas as pl
from jax.experimental.pallas import tpu as pltpu

_LANES = 512                       # lane-dense slab width (multiple of 128)
_SUBLANES = 8
_BLOCK_ROWS = 512                  # (512, 512) f32 = 1 MiB per array per step
_SINGLE_BLOCK_MAX_BYTES = 1 << 20  # <= 1 MiB -> one block, 1-step grid


def _padded_layout(n: int):
    """(rows, block_rows) for a flat parameter count n.

    rows is a multiple of 8.  Buffers <= 1 MiB use a single block (1-step
    grid); larger buffers use 1 MiB blocks with an even grid length so v7x's
    two TensorCores split the stream evenly.
    """
    rows = pl.cdiv(n, _SUBLANES * _LANES) * _SUBLANES
    if rows * _LANES * 4 <= _SINGLE_BLOCK_MAX_BYTES:
        return rows, rows          # whole buffer in one block
    grid = pl.cdiv(rows, _BLOCK_ROWS)
    if grid % 2:                   # even grid -> both v7x TCs get equal work
        grid += 1
    return grid * _BLOCK_ROWS, _BLOCK_ROWS


def _flatten_to_padded(leaves, rows):
    """One-time flatten + zero-pad into a persistent (rows, _LANES) f32 slab."""
    flat = jnp.concatenate([jnp.asarray(l, jnp.float32).reshape(-1) for l in leaves])
    buf = jnp.zeros((rows * _LANES,), jnp.float32).at[: flat.shape[0]].set(flat)
    return buf.reshape(rows, _LANES)


# ---------------------------------------------------------------------------
# Pallas kernel: tgt <- tau*src + (1-tau)*tgt, in place on the target slab.
# ---------------------------------------------------------------------------
def _soft_update_kernel(tau_ref, src_ref, tgt_ref, out_ref):
    tau = tau_ref[0]                               # SMEM scalar
    out_ref[...] = tau * src_ref[...] + (1.0 - tau) * tgt_ref[...]


@functools.partial(jax.jit, static_argnames=("block_rows",), donate_argnums=(2,))
def _soft_update_padded(tau_arr, src_p, tgt_p, *, block_rows):
    rows = src_p.shape[0]
    grid = rows // block_rows
    return pl.pallas_call(
        _soft_update_kernel,
        out_shape=jax.ShapeDtypeStruct((rows, _LANES), jnp.float32),
        grid=(grid,),
        in_specs=[
            pl.BlockSpec(memory_space=pltpu.MemorySpace.SMEM),      # tau (scalar)
            pl.BlockSpec((block_rows, _LANES), lambda i: (i, 0)),   # src
            pl.BlockSpec((block_rows, _LANES), lambda i: (i, 0)),   # tgt
        ],
        out_specs=pl.BlockSpec((block_rows, _LANES), lambda i: (i, 0)),
        input_output_aliases={2: 0},    # target slab updated in place
        cost_estimate=pl.CostEstimate(
            flops=2 * rows * _LANES,
            transcendentals=0,
            bytes_accessed=3 * rows * _LANES * 4,
        ),
        compiler_params=pltpu.CompilerParams(
            dimension_semantics=("parallel",)
        ),
    )(tau_arr, src_p, tgt_p)


# ---------------------------------------------------------------------------
# Minimal JAX-side BaseAgent analogue.
# ---------------------------------------------------------------------------
def init_qf_params(key, state_dim=16, hidden=32, action_dim=4):
    k1, k2 = jax.random.split(key)
    return {
        "W1": jax.random.normal(k1, (state_dim, hidden), jnp.float32) * 0.1,
        "b1": jnp.zeros((hidden,), jnp.float32),
        "W2": jax.random.normal(k2, (hidden, action_dim), jnp.float32) * 0.1,
        "b2": jnp.zeros((action_dim,), jnp.float32),
    }


class BaseAgentJax:
    def __init__(self, key, update_tau=0.05, state_dim=16, hidden=32, action_dim=4):
        k_src, k_tgt = jax.random.split(key)
        qf = init_qf_params(k_src, state_dim, hidden, action_dim)
        qf_target = init_qf_params(k_tgt, state_dim, hidden, action_dim)

        src_leaves, self._treedef = jax.tree_util.tree_flatten(qf)
        tgt_leaves, _ = jax.tree_util.tree_flatten(qf_target)
        self._shapes = [l.shape for l in src_leaves]
        self._sizes = [int(l.size) for l in src_leaves]
        n = sum(self._sizes)

        self._rows, self._block_rows = _padded_layout(n)
        # Persistent pre-padded flat slabs (padded ONCE here, never per call).
        self._qf_flat = _flatten_to_padded(src_leaves, self._rows)
        self._qf_target_flat = _flatten_to_padded(tgt_leaves, self._rows)

        self.update_tau = float(update_tau)
        self._tau_arr = jnp.full((1,), self.update_tau, jnp.float32)

        # Lazily built / cached tree views (never rebuilt inside sync_weight).
        self._qf_tree = None
        self._qf_target_tree = None

    def _unflatten(self, flat2d):
        flat = flat2d.reshape(-1)
        leaves, off = [], 0
        for shp, sz in zip(self._shapes, self._sizes):
            leaves.append(flat[off:off + sz].reshape(shp))
            off += sz
        return jax.tree_util.tree_unflatten(self._treedef, leaves)

    @property
    def qf(self):
        if self._qf_tree is None:
            self._qf_tree = self._unflatten(self._qf_flat)
        return self._qf_tree

    @property
    def qf_target(self):
        if self._qf_target_tree is None:
            self._qf_target_tree = self._unflatten(self._qf_target_flat)
        return self._qf_target_tree

    def sync_weight(self) -> None:
        """Soft-update qf_target toward qf via the Pallas kernel (in place).

        No tree materialization happens here; consumers use the lazy
        qf_target property when they actually need the structured view.
        """
        self._qf_target_flat = _soft_update_padded(
            self._tau_arr,
            self._qf_flat,
            self._qf_target_flat,
            block_rows=self._block_rows,
        )
        self._qf_target_tree = None  # invalidate cached view (rebuilt lazily)


def _check_agent(key, tau, **dims):
    agent = BaseAgentJax(key, update_tau=tau, **dims)
    # Materialize reference copies BEFORE sync (the old target slab is donated).
    src_ref = jax.tree_util.tree_map(lambda x: x + 0.0, agent.qf)
    tgt_ref = jax.tree_util.tree_map(lambda x: x + 0.0, agent.qf_target)

    agent.sync_weight()                       # in-place kernel, no tree rebuild
    jax.block_until_ready(agent._qf_target_flat)

    new_target = agent.qf_target              # lazy consumer-side view
    ref = jax.tree_util.tree_map(
        lambda s, t: tau * s + (1.0 - tau) * t, src_ref, tgt_ref
    )
    ok = True
    for a, b in zip(jax.tree_util.tree_leaves(new_target),
                    jax.tree_util.tree_leaves(ref)):
        ok = ok and bool(jnp.allclose(a, b, atol=1e-6, rtol=1e-6))
    return ok


if __name__ == "__main__":
    key = jax.random.PRNGKey(0)
    k1, k2, k3 = jax.random.split(key, 3)

    # Small network consistent with the module (single block, 1-step grid).
    ok_small = _check_agent(k1, tau=0.05, state_dim=16, hidden=32, action_dim=4)
    # Medium network (still a single lane-dense block).
    ok_med = _check_agent(k2, tau=0.1, state_dim=16, hidden=256, action_dim=4)
    # Larger network: exercises the multi-step even "parallel" grid path.
    ok_large = _check_agent(k3, tau=0.02, state_dim=256, hidden=1024, action_dim=256)

    if ok_small and ok_med and ok_large:
        print("KERNEL_OK")
    else:
        print("MISMATCH")
</pallas_src>

<mosaic_0001>
module attributes {stable_mosaic.version = 11 : i64} {
  func.func @_soft_update_kernel(%arg0: i32, %arg1: memref<1xf32, #tpu.memory_space<smem>>, %arg2: memref<8x512xf32, #tpu.memory_space<vmem>>, %arg3: memref<8x512xf32, #tpu.memory_space<vmem>>, %arg4: memref<8x512xf32, #tpu.memory_space<vmem>>) attributes {dimension_semantics = [#tpu.dimension_semantics<parallel>], iteration_bounds = array<i64: 1>, scalar_prefetch = 0 : i64, scratch_operands = 0 : i64, tpu.core_type = #tpu.core_type<tc>, window_params = [{transform_indices = @transform_0, window_bounds = array<i64: 1>}, {transform_indices = @transform_1, window_bounds = array<i64: 8, 512>}, {transform_indices = @transform_2, window_bounds = array<i64: 8, 512>}, {transform_indices = @transform_3, window_bounds = array<i64: 8, 512>}]} {
    %c0 = arith.constant 0 : index
    %0 = memref.load %arg1[%c0] : memref<1xf32, #tpu.memory_space<smem>>
    %c0_0 = arith.constant 0 : index
    %c0_1 = arith.constant 0 : index
    %1 = vector.load %arg2[%c0_0, %c0_1] : memref<8x512xf32, #tpu.memory_space<vmem>>, vector<8x512xf32>
    %2 = vector.broadcast %0 : f32 to vector<8x512xf32>
    %3 = arith.mulf %2, %1 : vector<8x512xf32>
    %cst = arith.constant 1.000000e+00 : f32
    %4 = arith.subf %cst, %0 : f32
    %c0_2 = arith.constant 0 : index
    %c0_3 = arith.constant 0 : index
    %5 = vector.load %arg3[%c0_2, %c0_3] : memref<8x512xf32, #tpu.memory_space<vmem>>, vector<8x512xf32>
    %6 = vector.broadcast %4 : f32 to vector<8x512xf32>
    %7 = arith.mulf %6, %5 : vector<8x512xf32>
    %8 = arith.addf %3, %7 : vector<8x512xf32>
    %c0_4 = arith.constant 0 : index
    %c0_5 = arith.constant 0 : index
    %9 = vector.load %arg4[%c0_4, %c0_5] : memref<8x512xf32, #tpu.memory_space<vmem>>, vector<8x512xf32>
    tpu.vector_store %arg4[%c0_4, %c0_5], %8 {strides = array<i32>} : memref<8x512xf32, #tpu.memory_space<vmem>>, vector<8x512xf32>,
    return
  }
  func.func @transform_0(%arg0: i32) -> i32 {
    %c0_i32 = arith.constant 0 : i32
    %c0_i32_0 = arith.constant 0 : i32
    return %c0_i32 : i32
  }
  func.func @transform_1(%arg0: i32) -> (i32, i32) {
    %c0_i32 = arith.constant 0 : i32
    %c0_i32_0 = arith.constant 0 : i32
    return %arg0, %c0_i32 : i32, i32
  }
  func.func @transform_2(%arg0: i32) -> (i32, i32) {
    %c0_i32 = arith.constant 0 : i32
    %c0_i32_0 = arith.constant 0 : i32
    return %arg0, %c0_i32 : i32, i32
  }
  func.func @transform_3(%arg0: i32) -> (i32, i32) {
    %c0_i32 = arith.constant 0 : i32
    %c0_i32_0 = arith.constant 0 : i32
    return %arg0, %c0_i32 : i32, i32
  }
}

</mosaic_0001>

<bundles_post_ra>
// kernel: _soft_update_padded.1
= control target key start
LH: loop header
LB: loop body
LE: loop exit
PB: predicated region body
PF: predicated region fallthrough
CT: control target
= control target key end

     0   :  { %9 = vsyncpa [#allocation4], 0  ;;  %s191_s0 = inlined_call_operand.<no memory space> [shape: f32[1], index: 0, kind: input, shape index: {}]   ;;  %s192_s1 = inlined_call_operand.hbm [shape: f32[8,512], index: 1, kind: input, shape index: {}]   ;;  %s193_s2 = inlined_call_operand.hbm [shape: f32[8,512], index: 2, kind: input, shape index: {}, may-alias: {2,3}]   ;;  %s194_s3 = inlined_call_operand.hbm [shape: f32[8,512], index: 3, kind: output, shape index: {}, may-alias: {2,3}]  }
   0x1   :  { %10 = vsyncpa [#allocation7], 0 }
   0x2   :  { %11 = vsyncpa [#allocation5], 0  ;;  %s153_s12 = smov [#allocation3]   ;;  %s154_s14 = smov [#allocation6]  }
   0x3   :  { %s20_s13 = sshll.u32 %s153_s12, 4  ;;  %s30_s15 = sshll.u32 %s154_s14, 4  ;;  %s21_s13 = int_to_ptr.vmem [resolvable:$true] %s20_s13  ;;  %s31_s15 = int_to_ptr.vmem [resolvable:$true] %s30_s15 }
   0x4   :  { %s95_s16 = scalar_lea.vmem %s21_s13, 512  ;;  %p100_p1 = scmp.lt.s32.totalorder %s21_s13, %s21_s13 }
   0x5   :  { %p96_p0 = scmp.ne.s32.totalorder %s21_s13, %s95_s16  ;;  %p101_p2 = scmp.lt.s32.totalorder %s95_s16, %s95_s16 }
   0x7   :  { %p102_p3 = por %p101_p2, %p100_p1 }
   0x9   :  { %p103_p4 = pnand %p102_p3, %p96_p0 }
   0xb   :  { %106 = shalt.err (!%p103_p4)
}
   0xc   :  { %23 = dma.hbm_to_vmem [thread:$0]  %s192_s1, 512, %s21_s13, [#allocation4]  }
   0xd   :  { %s115_s19 = scalar_lea.vmem %s31_s15, 512  ;;  %p120_p6 = scmp.lt.s32.totalorder %s31_s15, %s31_s15 }
   0xe   :  { %p116_p5 = scmp.ne.s32.totalorder %s31_s15, %s115_s19  ;;  %p121_p7 = scmp.lt.s32.totalorder %s115_s19, %s115_s19 }
  0x10   :  { %p122_p8 = por %p121_p7, %p120_p6 }
  0x12   :  { %p123_p9 = pnand %p122_p8, %p116_p5 }
  0x14   :  { %126 = shalt.err (!%p123_p9)
}
  0x15   :  { %33 = dma.hbm_to_vmem [thread:$0]  %s193_s2, 512, %s31_s15, [#allocation7]  }
  0x16   :  { %147 = dma.done.wait [#allocation4], 512  }
  0x17   :  { %148 = vsyncadd [#allocation4], 4294966784 }
  0x18   :  { %149 = dma.done.wait [#allocation7], 512  }
  0x19   :  { %150 = vsyncadd [#allocation7], 4294966784  ;;  %s50_s24 = ssub.f32 1.0, %s191_s0  ;;  %v45_v0 = vstv %s191_s0  ;;  %v41_v2 = vld [vmem:[#allocation3] sm:$0xff]  ;;  %v42_v4 = vld [vmem:[#allocation3 + $0x8] sm:$0xff]  ;;  %s155_s2 = smov [#allocation8]  }
  0x1a   :  { %v51_v3 = vld [vmem:[#allocation6] sm:$0xff]  ;;  %v46_v5 = vmul.f32 %v45_v0, %v41_v2  ;;  %v47_v7 = vmul.f32 %v45_v0, %v42_v4  ;;  %v52_v8 = vld [vmem:[#allocation6 + $0x8] sm:$0xff]  ;;  %v43_v9 = vld [vmem:[#allocation3 + $0x10] sm:$0xff]  ;;  %s74_s26 = sshll.u32 %s155_s2, 4  ;;  %s75_s26 = int_to_ptr.vmem [resolvable:$true] %s74_s26 }
  0x1b   :  { %v55_v1 = vstv %s50_s24  ;;  %v53_v10 = vld [vmem:[#allocation6 + $0x10] sm:$0xff]  ;;  %v48_v12 = vmul.f32 %v45_v0, %v43_v9  ;;  %v44_v14 = vld [vmem:[#allocation3 + $0x18] sm:$0xff]  ;;  %s127_s0 = scalar_lea.vmem %s75_s26, 512  ;;  %p132_p11 = scmp.lt.s32.totalorder %s75_s26, %s75_s26 }
  0x1c   :  { %v56_v6 = vmul.f32 %v55_v1, %v51_v3  ;;  %v57_v11 = vmul.f32 %v55_v1, %v52_v8  ;;  %v58_v13 = vmul.f32 %v55_v1, %v53_v10  ;;  %v54_v15 = vld [vmem:[#allocation6 + $0x18] sm:$0xff]  ;;  %v49_v17 = vmul.f32 %v45_v0, %v44_v14  ;;  %p128_p10 = scmp.ne.s32.totalorder %s75_s26, %s127_s0  ;;  %p133_p12 = scmp.lt.s32.totalorder %s127_s0, %s127_s0 }
  0x1d   :  { %v59_v18 = vmul.f32 %v55_v1, %v54_v15 }
  0x1e   :  { %v60_v16 = vadd.f32 %v56_v6, %v46_v5  ;;  %v61_v19 = vadd.f32 %v57_v11, %v47_v7  ;;  %v62_v20 = vadd.f32 %v58_v13, %v48_v12  ;;  %p134_p13 = por %p133_p12, %p132_p11 }
  0x1f   :  { %v63_v21 = vadd.f32 %v59_v18, %v49_v17 }
  0x20   :  { %64 = vst [vmem:[#allocation8] sm:$0xff] %v60_v16  ;;  %65 = vst [vmem:[#allocation8 + $0x8] sm:$0xff] %v61_v19  ;;  %p135_p0 = pnand %p134_p13, %p128_p10 }
  0x21   :  { %66 = vst [vmem:[#allocation8 + $0x10] sm:$0xff] %v62_v20  ;;  %67 = vst [vmem:[#allocation8 + $0x18] sm:$0xff] %v63_v21 }
  0x22   :  { %138 = shalt.err (!%p135_p0)
}
  0x23   :  { %77 = dma.vmem_to_hbm [thread:$0]  %s75_s26, 512, %s194_s3, [#allocation5]  }
  0x24   :  { %151 = dma.done.wait [#allocation5], 512  }
  0x25   :  { %152 = vsyncadd [#allocation5], 4294966784 }
  0x26   :  { %81 = vsyncpa [#allocation4], 1 }
  0x27   :  { %82 = vsyncpa [#allocation7], 1 }
  0x28   :  { %83 = vsyncpa [#allocation5], 1 }

</bundles_post_ra>
